<compile_context>
chip_gen: v6e
topology: v6e:2x2x1
jax: 0.10.0
libtpu: 0.0.40
codegen_flags: <defaults>
</compile_context>

<pallas_src>
import jax
import jax.numpy as jnp
from jax.experimental import pallas as pl
from jax.experimental.pallas import tpu as pltpu

C_IN = 3
C_OUT = 19
KSIZE = 3
PAD = 1
SUBLANE = 8                 # each tap group padded to an 8-sublane boundary
KROWS = KSIZE * SUBLANE     # 24 im2col rows fed to the MXU

# Clamp bounds from the module constructor (both None in the reference script).
CLAMP_MIN = None
CLAMP_MAX = None


def _make_conv_clamp_kernel(n_batch, length):
    """Single-invocation kernel.

    x_ref:       (N, C_IN, L)      raw input, full-array VMEM block
    w_ref:       (C_OUT, KROWS)    im2col weight, column k*8 + c = weight[:, c, k]
    b_ref:       (C_OUT, 1)        bias
    o_ref:       (N, C_OUT, L)     output, written per-batch (no wrapper transpose)
    patches_ref: (KROWS, N*L)      sublane-aligned im2col scratch
    """
    m_total = n_batch * length
    del m_total  # shapes are carried by the refs

    def kernel(x_ref, w_ref, b_ref, o_ref, patches_ref):
        # ---- im2col assembly: taps live at sublane offsets 0, 8, 16 ----------
        # Zero once: (a) padded weight rows multiply well-defined zeros and
        # (b) the conv's zero-padding at batch/sequence edges is free.
        patches_ref[...] = jnp.zeros_like(patches_ref)
        for n in range(n_batch):               # static Python loops (N=2, K=3)
            xb = x_ref[n]                      # (C_IN, L)
            for k in range(KSIZE):
                d = k - PAD                    # tap offset: -1, 0, +1
                src_lo = max(0, d)
                dst_lo = n * length + max(0, -d)
                cnt = length - abs(d)
                patches_ref[k * SUBLANE:k * SUBLANE + C_IN,
                            dst_lo:dst_lo + cnt] = xb[:, src_lo:src_lo + cnt]

        # ---- single MXU push over all taps/channels, one VPU bias add --------
        acc = jnp.dot(w_ref[...], patches_ref[...],
                      precision=jax.lax.Precision.HIGHEST,
                      preferred_element_type=jnp.float32)     # (C_OUT, N*L)
        acc = acc + b_ref[...]                                # (C_OUT, 1) broadcast

        # clamp(min, max): static Python bounds; both None -> identity.
        if CLAMP_MIN is not None:
            acc = jnp.maximum(acc, CLAMP_MIN)
        if CLAMP_MAX is not None:
            acc = jnp.minimum(acc, CLAMP_MAX)
        acc = acc.astype(o_ref.dtype)

        # ---- write (N, C_OUT, L) directly: one 64-lane store per batch -------
        for n in range(n_batch):
            o_ref[n] = acc[:, n * length:(n + 1) * length]

    return kernel


def prepare_params(weight, bias):
    """One-time parameter preprocessing (outside the per-call graph).

    weight: (C_OUT, C_IN, K)  ->  (C_OUT, KROWS) im2col weight padded so each
    tap occupies an 8-sublane-aligned group (column k*8 + c = weight[:, c, k]).
    """
    w_t = jnp.transpose(weight, (0, 2, 1))                    # (C_OUT, K, C_IN)
    w_pad = jnp.pad(w_t, ((0, 0), (0, 0), (0, SUBLANE - C_IN)))
    w_pad = w_pad.reshape(C_OUT, KROWS).astype(jnp.float32)
    b2d = bias.reshape(C_OUT, 1).astype(jnp.float32)
    return w_pad, b2d


def model1_forward(x, w_pad, b2d):
    """x: (N, C_IN, L) float32.  Returns (N, C_OUT, L) float32."""
    N, c_in, L = x.shape
    assert c_in == C_IN
    M = N * L

    flops = 2 * N * C_OUT * C_IN * KSIZE * L
    bytes_accessed = 4 * (x.size + w_pad.size + b2d.size + N * C_OUT * L)

    return pl.pallas_call(
        _make_conv_clamp_kernel(N, L),
        out_shape=jax.ShapeDtypeStruct((N, C_OUT, L), x.dtype),
        in_specs=[
            pl.BlockSpec(memory_space=pltpu.MemorySpace.VMEM),
            pl.BlockSpec(memory_space=pltpu.MemorySpace.VMEM),
            pl.BlockSpec(memory_space=pltpu.MemorySpace.VMEM),
        ],
        out_specs=pl.BlockSpec(memory_space=pltpu.MemorySpace.VMEM),
        scratch_shapes=[pltpu.VMEM((KROWS, M), jnp.float32)],
        cost_estimate=pl.CostEstimate(
            flops=flops, transcendentals=0, bytes_accessed=bytes_accessed),
    )(x, w_pad, b2d)


def init_params(key):
    """PyTorch Conv1d default init: U(-1/sqrt(fan_in), 1/sqrt(fan_in))."""
    kw, kb = jax.random.split(key)
    fan_in = C_IN * KSIZE
    bound = 1.0 / jnp.sqrt(float(fan_in))
    weight = jax.random.uniform(
        kw, (C_OUT, C_IN, KSIZE), dtype=jnp.float32, minval=-bound, maxval=bound
    )
    bias = jax.random.uniform(
        kb, (C_OUT,), dtype=jnp.float32, minval=-bound, maxval=bound
    )
    return weight, bias


def reference_forward(x, weight, bias):
    """Pure-JAX reference (lax.conv) for a correctness check."""
    out = jax.lax.conv_general_dilated(
        x, weight,
        window_strides=(1,),
        padding=((PAD, PAD),),
        dimension_numbers=("NCH", "OIH", "NCH"),
        precision=jax.lax.Precision.HIGHEST,
    )
    out = out + bias.reshape(1, C_OUT, 1)
    return out  # clamp(None, None) is identity


if __name__ == "__main__":
    key = jax.random.PRNGKey(0)
    kp, kx = jax.random.split(key)

    weight, bias = init_params(kp)
    # Matches the reference script: x1 = torch.randn(2, 3, 64)
    x = jax.random.normal(kx, (2, 3, 64), dtype=jnp.float32)

    # One-time im2col weight padding (kept out of the per-call graph).
    w_pad, b2d = jax.block_until_ready(prepare_params(weight, bias))

    fwd = jax.jit(model1_forward)
    out = fwd(x, w_pad, b2d)
    out = jax.block_until_ready(out)

    ref = reference_forward(x, weight, bias)
    assert out.shape == (2, 19, 64), out.shape
    assert jnp.allclose(out, ref, atol=1e-5, rtol=1e-5), float(
        jnp.max(jnp.abs(out - ref))
    )

    print("KERNEL_OK")
</pallas_src>

<mosaic_0001>
module attributes {stable_mosaic.version = 11 : i64} {
  func.func @kernel(%arg0: memref<2x3x64xf32, #tpu.memory_space<vmem>>, %arg1: memref<19x24xf32, #tpu.memory_space<vmem>>, %arg2: memref<19x1xf32, #tpu.memory_space<vmem>>, %arg3: memref<2x19x64xf32, #tpu.memory_space<vmem>>, %arg4: memref<24x128xf32, #tpu.memory_space<vmem>>) attributes {dimension_semantics = [], scalar_prefetch = 0 : i64, scratch_operands = 1 : i64, tpu.core_type = #tpu.core_type<tc>} {
    %cst = arith.constant 0.000000e+00 : f32
    %0 = vector.broadcast %cst : f32 to vector<24x128xf32>
    %c0 = arith.constant 0 : index
    %c0_0 = arith.constant 0 : index
    %1 = vector.load %arg4[%c0, %c0_0] : memref<24x128xf32, #tpu.memory_space<vmem>>, vector<24x128xf32>
    tpu.vector_store %arg4[%c0, %c0_0], %0 {strides = array<i32>} : memref<24x128xf32, #tpu.memory_space<vmem>>, vector<24x128xf32>,
    %c0_1 = arith.constant 0 : index
    %c0_2 = arith.constant 0 : index
    %c0_3 = arith.constant 0 : index
    %2 = vector.load %arg0[%c0_1, %c0_2, %c0_3] : memref<2x3x64xf32, #tpu.memory_space<vmem>>, vector<1x3x64xf32>
    %3 = vector.shape_cast %2 : vector<1x3x64xf32> to vector<3x64xf32>
    %4 = vector.extract_strided_slice %3 {offsets = [0, 0], sizes = [3, 63], strides = [1, 1]} : vector<3x64xf32> to vector<3x63xf32>
    %c0_4 = arith.constant 0 : index
    %c1 = arith.constant 1 : index
    %5 = vector.load %arg4[%c0_4, %c1] : memref<24x128xf32, #tpu.memory_space<vmem>>, vector<3x63xf32>
    tpu.vector_store %arg4[%c0_4, %c1], %4 {strides = array<i32>} : memref<24x128xf32, #tpu.memory_space<vmem>>, vector<3x63xf32>,
    %c8 = arith.constant 8 : index
    %c0_5 = arith.constant 0 : index
    %6 = vector.load %arg4[%c8, %c0_5] : memref<24x128xf32, #tpu.memory_space<vmem>>, vector<3x64xf32>
    tpu.vector_store %arg4[%c8, %c0_5], %3 {strides = array<i32>} : memref<24x128xf32, #tpu.memory_space<vmem>>, vector<3x64xf32>,
    %7 = vector.extract_strided_slice %3 {offsets = [0, 1], sizes = [3, 63], strides = [1, 1]} : vector<3x64xf32> to vector<3x63xf32>
    %c16 = arith.constant 16 : index
    %c0_6 = arith.constant 0 : index
    %8 = vector.load %arg4[%c16, %c0_6] : memref<24x128xf32, #tpu.memory_space<vmem>>, vector<3x63xf32>
    tpu.vector_store %arg4[%c16, %c0_6], %7 {strides = array<i32>} : memref<24x128xf32, #tpu.memory_space<vmem>>, vector<3x63xf32>,
    %c1_7 = arith.constant 1 : index
    %c0_8 = arith.constant 0 : index
    %c0_9 = arith.constant 0 : index
    %9 = vector.load %arg0[%c1_7, %c0_8, %c0_9] : memref<2x3x64xf32, #tpu.memory_space<vmem>>, vector<1x3x64xf32>
    %10 = vector.shape_cast %9 : vector<1x3x64xf32> to vector<3x64xf32>
    %11 = vector.extract_strided_slice %10 {offsets = [0, 0], sizes = [3, 63], strides = [1, 1]} : vector<3x64xf32> to vector<3x63xf32>
    %c0_10 = arith.constant 0 : index
    %c65 = arith.constant 65 : index
    %12 = vector.load %arg4[%c0_10, %c65] : memref<24x128xf32, #tpu.memory_space<vmem>>, vector<3x63xf32>
    tpu.vector_store %arg4[%c0_10, %c65], %11 {strides = array<i32>} : memref<24x128xf32, #tpu.memory_space<vmem>>, vector<3x63xf32>,
    %c8_11 = arith.constant 8 : index
    %c64 = arith.constant 64 : index
    %13 = vector.load %arg4[%c8_11, %c64] : memref<24x128xf32, #tpu.memory_space<vmem>>, vector<3x64xf32>
    tpu.vector_store %arg4[%c8_11, %c64], %10 {strides = array<i32>} : memref<24x128xf32, #tpu.memory_space<vmem>>, vector<3x64xf32>,
    %14 = vector.extract_strided_slice %10 {offsets = [0, 1], sizes = [3, 63], strides = [1, 1]} : vector<3x64xf32> to vector<3x63xf32>
    %c16_12 = arith.constant 16 : index
    %c64_13 = arith.constant 64 : index
    %15 = vector.load %arg4[%c16_12, %c64_13] : memref<24x128xf32, #tpu.memory_space<vmem>>, vector<3x63xf32>
    tpu.vector_store %arg4[%c16_12, %c64_13], %14 {strides = array<i32>} : memref<24x128xf32, #tpu.memory_space<vmem>>, vector<3x63xf32>,
    %c0_14 = arith.constant 0 : index
    %c0_15 = arith.constant 0 : index
    %16 = vector.load %arg1[%c0_14, %c0_15] : memref<19x24xf32, #tpu.memory_space<vmem>>, vector<19x24xf32>
    %c0_16 = arith.constant 0 : index
    %c0_17 = arith.constant 0 : index
    %17 = vector.load %arg4[%c0_16, %c0_17] : memref<24x128xf32, #tpu.memory_space<vmem>>, vector<24x128xf32>
    %cst_18 = arith.constant dense<0.000000e+00> : vector<19x128xf32>
    %18 = tpu.matmul %16, %17, %cst_18 {dimension_numbers = #tpu.dot_dimension_numbers<[1], [0], [0], [1], [0, 0, 1, 1], [], []>, precision = #tpu.contract_precision<fp32>} : vector<19x24xf32>, vector<24x128xf32>, vector<19x128xf32> -> vector<19x128xf32>
    %c0_19 = arith.constant 0 : index
    %c0_20 = arith.constant 0 : index
    %19 = vector.load %arg2[%c0_19, %c0_20] : memref<19x1xf32, #tpu.memory_space<vmem>>, vector<19x1xf32>
    %20 = vector.broadcast %19 : vector<19x1xf32> to vector<19x128xf32>
    %21 = arith.addf %18, %20 : vector<19x128xf32>
    %22 = vector.extract_strided_slice %21 {offsets = [0, 0], sizes = [19, 64], strides = [1, 1]} : vector<19x128xf32> to vector<19x64xf32>
    %c0_21 = arith.constant 0 : index
    %c0_22 = arith.constant 0 : index
    %c0_23 = arith.constant 0 : index
    %23 = vector.load %arg3[%c0_21, %c0_22, %c0_23] : memref<2x19x64xf32, #tpu.memory_space<vmem>>, vector<1x19x64xf32>
    %24 = vector.shape_cast %23 : vector<1x19x64xf32> to vector<19x64xf32>
    %25 = vector.shape_cast %22 : vector<19x64xf32> to vector<1x19x64xf32>
    tpu.vector_store %arg3[%c0_21, %c0_22, %c0_23], %25 {strides = array<i32>} : memref<2x19x64xf32, #tpu.memory_space<vmem>>, vector<1x19x64xf32>,
    %26 = vector.extract_strided_slice %21 {offsets = [0, 64], sizes = [19, 64], strides = [1, 1]} : vector<19x128xf32> to vector<19x64xf32>
    %c1_24 = arith.constant 1 : index
    %c0_25 = arith.constant 0 : index
    %c0_26 = arith.constant 0 : index
    %27 = vector.load %arg3[%c1_24, %c0_25, %c0_26] : memref<2x19x64xf32, #tpu.memory_space<vmem>>, vector<1x19x64xf32>
    %28 = vector.shape_cast %27 : vector<1x19x64xf32> to vector<19x64xf32>
    %29 = vector.shape_cast %26 : vector<19x64xf32> to vector<1x19x64xf32>
    tpu.vector_store %arg3[%c1_24, %c0_25, %c0_26], %29 {strides = array<i32>} : memref<2x19x64xf32, #tpu.memory_space<vmem>>, vector<1x19x64xf32>,
    return
  }
}

</mosaic_0001>

<bundles_post_ra>
// kernel: model1_forward.1
= control target key start
LH: loop header
LB: loop body
LE: loop exit
PB: predicated region body
PF: predicated region fallthrough
CT: control target
= control target key end

     0   :  { %vm24_vm0 = vcmask 518144   ;;  %v805_v2 = vmov 0.0   ;;  %s806_s16 = smov 64   ;;  %s807_s17 = smov 127   ;;  %vm810_vm1 = vmmov 0   ;;  %v812_v3 = vmov 0   ;;  %s1009_s0 = inlined_call_operand.vmem [shape: f32[2,3,64], index: 0, kind: input, shape index: {}]   ;;  %s1010_s2 = inlined_call_operand.vmem [shape: f32[19,1], index: 2, kind: input, shape index: {}]   ;;  %s1011_s1 = inlined_call_operand.vmem [shape: f32[19,24], index: 1, kind: input, shape index: {}]   ;;  %s1012_s3 = inlined_call_operand.vmem [shape: f32[2,19,64], index: 3, kind: output, shape index: {}]  }
   0x1   :  { %v665_v0 = vld [vmem:[%s1009_s0 + $0x4] sm:$0x7]  ;;  %v17_v1 = vld [vmem:[%s1009_s0] sm:$0x7]  ;;  %15 = vst [vmem:[#allocation2 + $0x8] sm:$0xff] %v805_v2  ;;  %14 = vst [vmem:[#allocation2] sm:$0xff] %v805_v2  ;;  %705 = vmatprep.subr.mxu0 %v805_v2  ;;  %720 = vmatprep.subr.mxu1 %v805_v2 }
   0x2   :  { %16 = vst [vmem:[#allocation2 + $0x10] sm:$0xff] %v805_v2  ;;  %39 = vrot.lane.b32.xlu1 %v665_v0, %s806_s16  ;;  %26 = vrot.lane.b32.xlu0 %v17_v1, %s807_s17  ;;  %25 = vst.msk [vmem:[#allocation2 + $0x8] sm:$0x7] %vm24_vm0, %v17_v1  ;;  %s808_s18 = smov 63   ;;  %s809_s0 = smov 1   ;;  %v55_v4 = vld [vmem:[%s1010_s2] sm:$0xff] }
   0x3   :  { %711 = vmatprep.mubr.msk.f32.mxu0 %vm810_vm1, %v805_v2  ;;  %726 = vmatprep.mubr.msk.f32.mxu1 %vm810_vm1, %v805_v2  ;;  %s811_s19 = smov 65   ;;  %v56_v5 = vld [vmem:[%s1010_s2 + $0x8] sm:$0xff]  ;;  %v57_v6 = vld [vmem:[%s1010_s2 + $0x10] sm:$0x7]  ;;  %v49_v7 = vld [vmem:[%s1011_s1] sm:$0xff]  ;;  %vm73_vm2 = vcmask 195584  }
   0x4   :  { %803 = vset.pattern.permute.xlu1 %v812_v3  ;;  %804 = vset.pattern.permute.xlu0 %v812_v3  ;;  %v75_v8 = vsel %vm73_vm2, %v49_v7, 0  ;;  %vm42_vm3 = vcmask 1042944   ;;  %vm29_vm4 = vcmask 509952   ;;  %v50_v9 = vld [vmem:[%s1011_s1 + $0x8] sm:$0xff]  ;;  %vm47_vm5 = vcmask 1034752  }
   0x5   :  { %v866_v12 = vand.u32 4294901760, %v75_v8  ;;  %v78_v13 = vsel %vm73_vm2, %v50_v9, 0  ;;  %vm22_vm6 = vcmask 518152   ;;  %v51_v14 = vld [vmem:[%s1011_s1 + $0x10] sm:$0x7]  ;;  %vm37_vm7 = vcmask 1042952  }
   0x6   :  { %44 = vrot.lane.b32.xlu0 %v665_v0, %s808_s18  ;;  %19 = vrot.lane.b32.xlu1 %v17_v1, %s809_s0  ;;  %v875_v18 = vand.u32 4294901760, %v78_v13  ;;  %v81_v19 = vsel %vm73_vm2, %v51_v14, 0  ;;  %vm641_vm8 = vcmask 523264  }
   0x7   :  { %v873_v17 = vsub.f32 %v75_v8, %v866_v12  ;;  %v882_v24 = vand.u32 4294901760, %v81_v19 }
   0x8   :  { %v880_v23 = vsub.f32 %v78_v13, %v875_v18 }
   0x9   :  { %v153_v22 = vand.u32 4294901760, %v873_v17  ;;  %v892_v30 = vsub.f32 %v81_v19, %v882_v24 }
   0xa   :  { %34 = vrot.lane.b32.xlu0 %v665_v0, %s811_s19  ;;  %60 = vperm.xlu1 %803, %v55_v4   ;;  %v163_v29 = vand.u32 4294901760, %v880_v23 }
   0xb   :  { %v154_v28 = vsub.f32 %v873_v17, %v153_v22  ;;  %v173_v37 = vand.u32 4294901760, %v892_v30 }
   0xc   :  { %v164_v36 = vsub.f32 %v880_v23, %v163_v29 }
   0xd   :  { %v155_v35 = vand.u32 4294901760, %v154_v28  ;;  %v174_v44 = vsub.f32 %v892_v30, %v173_v37 }
   0xe   :  { %65 = vperm.xlu0 %804, %v56_v5   ;;  %70 = vperm.xlu1 %803, %v57_v6   ;;  %v165_v43 = vand.u32 4294901760, %v164_v36 }
   0xf   :  { %v175_v49 = vand.u32 4294901760, %v174_v44 }
  0x74   :  { %v40_v10 = vpop.permute.xlu1 %39  ;;  %v27_v11 = vpop.permute.xlu0 %26 }
  0x75   :  { %43 = vst.msk [vmem:[#allocation2 + $0x8] sm:$0x7] %vm42_vm3, %v40_v10 }
  0x76   :  { %30 = vst.msk [vmem:[#allocation2 + $0x10] sm:$0x7] %vm29_vm4, %v27_v11 }
  0x78   :  { %v45_v15 = vpop.permute.xlu0 %44  ;;  %v20_v16 = vpop.permute.xlu1 %19 }
  0x79   :  { %48 = vst.msk [vmem:[#allocation2 + $0x10] sm:$0x7] %vm47_vm5, %v45_v15 }
  0x7a   :  { %23 = vst.msk [vmem:[#allocation2] sm:$0x7] %vm22_vm6, %v20_v16 }
  0x7c   :  { %v35_v20 = vpop.permute.xlu0 %34  ;;  %v53_v21 = vld [vmem:[#allocation2 + $0x8] sm:$0xff] }
  0x7d   :  { %38 = vst.msk [vmem:[#allocation2] sm:$0x7] %vm37_vm7, %v35_v20  ;;  %v884_v25 = vand.u32 4294901760, %v53_v21 }
  0x7f   :  { %v216_v26 = vsub.f32 %v53_v21, %v884_v25 }
  0x80   :  { %v54_v27 = vld [vmem:[#allocation2 + $0x10] sm:$0xff] }
  0x81   :  { %v894_v31 = vand.u32 4294901760, %v54_v27  ;;  %v217_v33 = vand.u32 4294901760, %v216_v26 }
  0x83   :  { %706 = vmatpush3.msra.mxu0 %v894_v31  ;;  %v209_v32 = vsub.f32 %v54_v27, %v894_v31  ;;  %v218_v41 = vsub.f32 %v216_v26, %v217_v33 }
  0x84   :  { %707 = vmatprep.subr.mxu0 %v805_v2  ;;  %v52_v34 = vld [vmem:[#allocation2] sm:$0xff] }
  0x85   :  { %708 = vmatpush3.msra.mxu0 %v884_v25  ;;  %v904_v38 = vand.u32 4294901760, %v52_v34  ;;  %v210_v39 = vand.u32 4294901760, %v209_v32  ;;  %v219_v47 = vand.u32 4294901760, %v218_v41  ;;  %v61_v1 = vpop.permute.xlu1 %60 }
  0x86   :  { %709 = vmatprep.subr.mxu0 %v805_v2 }
  0x87   :  { %710 = vmatpush3.msra.mxu0 %v904_v38  ;;  %v211_v40 = vsub.f32 %v209_v32, %v210_v39  ;;  %v223_v42 = vsub.f32 %v52_v34, %v904_v38 }
  0x88   :  { %712 = vmatmul.mubr.f32.vlgmr.msra.gmra.mxu0 %v155_v35  ;;  %735 = vmatprep.subr.mxu0 %v805_v2 }
  0x89   :  { %736 = vmatpush3.msra.mxu0 %v209_v32  ;;  %714 = vmatprep.mubr.msk.f32.mxu0 %vm810_vm1, %v805_v2  ;;  %v212_v45 = vand.u32 4294901760, %v211_v40  ;;  %v224_v46 = vand.u32 4294901760, %v223_v42  ;;  %v66_v7 = vpop.permute.xlu0 %65  ;;  %v71_v14 = vpop.permute.xlu1 %70 }
  0x8a   :  { %737 = vmatprep.subr.mxu0 %v805_v2 }
  0x8b   :  { %721 = vmatpush3.msra.mxu1 %v212_v45  ;;  %738 = vmatpush3.msra.mxu0 %v216_v26  ;;  %v225_v48 = vsub.f32 %v223_v42, %v224_v46 }
  0x8c   :  { %715 = vmatmul.mubr.f32.gmra.mxu0 %v165_v43  ;;  %722 = vmatprep.subr.mxu1 %v805_v2 }
  0x8d   :  { %739 = vmatprep.subr.mxu0 %v805_v2  ;;  %723 = vmatpush3.msra.mxu1 %v219_v47  ;;  %v226_v50 = vand.u32 4294901760, %v225_v48 }
  0x8e   :  { %740 = vmatpush3.msra.mxu0 %v223_v42  ;;  %724 = vmatprep.subr.mxu1 %v805_v2 }
  0x8f   :  { %717 = vmatprep.mubr.msk.f32.mxu0 %vm810_vm1, %v805_v2  ;;  %725 = vmatpush3.msra.mxu1 %v226_v50 }
  0x90   :  { %718 = vmatmul.mubr.f32.gmra.mxu0 %v175_v49  ;;  %727 = vmatmul.mubr.f32.vlgmr.msra.gmra.mxu1 %v866_v12 }
  0x91   :  { %750 = vmatprep.subr.mxu1 %v805_v2  ;;  %729 = vmatprep.mubr.msk.f32.mxu1 %vm810_vm1, %v805_v2 }
  0x92   :  { %751 = vmatpush3.msra.mxu1 %v894_v31  ;;  %741 = vmatprep.mubr.msk.f32.mxu0 %vm810_vm1, %v805_v2 }
  0x93   :  { %752 = vmatprep.subr.mxu1 %v805_v2  ;;  %765 = vmatprep.subr.mxu0 %v805_v2 }
  0x94   :  { %753 = vmatpush3.msra.mxu1 %v884_v25  ;;  %742 = vmatmul.mubr.f32.vlgmr.msra.gmra.mxu0 %v873_v17 }
  0x95   :  { %730 = vmatmul.mubr.f32.gmra.mxu1 %v875_v18  ;;  %754 = vmatprep.subr.mxu1 %v805_v2 }
  0x96   :  { %766 = vmatpush3.msra.mxu0 %v210_v39  ;;  %755 = vmatpush3.msra.mxu1 %v904_v38 }
  0x97   :  { %767 = vmatprep.subr.mxu0 %v805_v2  ;;  %732 = vmatprep.mubr.msk.f32.mxu1 %vm810_vm1, %v805_v2 }
  0x98   :  { %768 = vmatpush3.msra.mxu0 %v217_v33  ;;  %744 = vmatprep.mubr.msk.f32.mxu0 %vm810_vm1, %v805_v2 }
  0x99   :  { %769 = vmatprep.subr.mxu0 %v805_v2  ;;  %733 = vmatmul.mubr.f32.gmra.mxu1 %v882_v24 }
  0x9a   :  { %745 = vmatmul.mubr.f32.gmra.mxu0 %v880_v23  ;;  %756 = vmatprep.mubr.msk.f32.mxu1 %vm810_vm1, %v805_v2 }
  0x9b   :  { %770 = vmatpush3.msra.mxu0 %v224_v46  ;;  %747 = vmatprep.mubr.msk.f32.mxu0 %vm810_vm1, %v805_v2 }
  0x9c   :  { %780 = vmatprep.subr.mxu1 %v805_v2 }
  0x9d   :  { %757 = vmatmul.mubr.f32.vlgmr.msra.gmra.mxu1 %v153_v22 }
  0x9e   :  { %748 = vmatmul.mubr.f32.gmra.mxu0 %v892_v30  ;;  %781 = vmatpush3.msra.mxu1 %v894_v31 }
  0x9f   :  { %782 = vmatprep.subr.mxu1 %v805_v2  ;;  %759 = vmatprep.mubr.msk.f32.mxu1 %vm810_vm1, %v805_v2 }
  0xa0   :  { %783 = vmatpush3.msra.mxu1 %v884_v25  ;;  %771 = vmatprep.mubr.msk.f32.mxu0 %vm810_vm1, %v805_v2 }
  0xa1   :  { %784 = vmatprep.subr.mxu1 %v805_v2  ;;  %760 = vmatmul.mubr.f32.gmra.mxu1 %v163_v29 }
  0xa2   :  { %772 = vmatmul.mubr.f32.vlgmr.msra.gmra.mxu0 %v866_v12  ;;  %785 = vmatpush3.msra.mxu1 %v904_v38 }
  0xa3   :  { %762 = vmatprep.mubr.msk.f32.mxu1 %vm810_vm1, %v805_v2  ;;  %774 = vmatprep.mubr.msk.f32.mxu0 %vm810_vm1, %v805_v2 }
  0xa5   :  { %763 = vmatmul.mubr.f32.gmra.mxu1 %v173_v37 }
  0xa6   :  { %775 = vmatmul.mubr.f32.gmra.mxu0 %v875_v18  ;;  %786 = vmatprep.mubr.msk.f32.mxu1 %vm810_vm1, %v805_v2 }
  0xa7   :  { %777 = vmatprep.mubr.msk.f32.mxu0 %vm810_vm1, %v805_v2 }
  0xa9   :  { %787 = vmatmul.mubr.f32.vlgmr.msra.gmra.mxu1 %v866_v12 }
  0xaa   :  { %778 = vmatmul.mubr.f32.gmra.mxu0 %v882_v24  ;;  %789 = vmatprep.mubr.msk.f32.mxu1 %vm810_vm1, %v805_v2 }
  0xad   :  { %790 = vmatmul.mubr.f32.gmra.mxu1 %v875_v18 }
  0xae   :  { %792 = vmatprep.mubr.msk.f32.mxu1 %vm810_vm1, %v805_v2 }
  0xb1   :  { %793 = vmatmul.mubr.f32.gmra.mxu1 %v882_v24 }
 0x148   :  { %v157_v51 = vpop.f32.mrf.mxu0 }
 0x149   :  { %v158_v5 = vadd.f32 %v157_v51, %v61_v1 }
 0x14a   :  { %v713_v52 = vpop.f32.mrf.mxu0 }
 0x14c   :  { %v167_v53 = vpop.f32.mrf.mxu0 }
 0x14d   :  { %v168_v12 = vadd.f32 %v167_v53, %v66_v7 }
 0x14e   :  { %v716_v54 = vpop.f32.mrf.mxu0 }
 0x150   :  { %v177_v55 = vpop.f32.mrf.mxu0  ;;  %v263_v56 = vpop.f32.mrf.mxu1 }
 0x151   :  { %v264_v11 = vadd.f32 %v263_v56, %v158_v5  ;;  %v178_v20 = vadd.f32 %v177_v55, %v71_v14 }
 0x152   :  { %v719_v57 = vpop.f32.mrf.mxu0  ;;  %v728_v58 = vpop.f32.mrf.mxu1 }
 0x154   :  { %v353_v59 = vpop.f32.mrf.mxu0 }
 0x155   :  { %v269_v60 = vpop.f32.mrf.mxu1  ;;  %v354_v16 = vadd.f32 %v353_v59, %v264_v11 }
 0x156   :  { %v743_v61 = vpop.f32.mrf.mxu0  ;;  %v270_v19 = vadd.f32 %v269_v60, %v168_v12 }
 0x157   :  { %v731_v62 = vpop.f32.mrf.mxu1 }
 0x159   :  { %v275_v63 = vpop.f32.mrf.mxu1 }
 0x15a   :  { %v360_v0 = vpop.f32.mrf.mxu0  ;;  %v276_v28 = vadd.f32 %v275_v63, %v178_v20 }
 0x15b   :  { %v734_v3 = vpop.f32.mrf.mxu1  ;;  %v361_v24 = vadd.f32 %v360_v0, %v270_v19 }
 0x15c   :  { %v746_v4 = vpop.f32.mrf.mxu0 }
 0x15d   :  { %v443_v2 = vpop.f32.mrf.mxu1 }
 0x15e   :  { %v367_v6 = vpop.f32.mrf.mxu0  ;;  %v444_v21 = vadd.f32 %v443_v2, %v354_v16 }
 0x15f   :  { %v758_v8 = vpop.f32.mrf.mxu1  ;;  %v368_v33 = vadd.f32 %v367_v6, %v276_v28 }
 0x160   :  { %v749_v9 = vpop.f32.mrf.mxu0 }
 0x161   :  { %v451_v10 = vpop.f32.mrf.mxu1 }
 0x162   :  { %v539_v13 = vpop.f32.mrf.mxu0  ;;  %v452_v29 = vadd.f32 %v451_v10, %v361_v24 }
 0x163   :  { %v761_v15 = vpop.f32.mrf.mxu1  ;;  %v540_v25 = vadd.f32 %v539_v13, %v444_v21 }
 0x164   :  { %v773_v17 = vpop.f32.mrf.mxu0 }
 0x165   :  { %v459_v18 = vpop.f32.mrf.mxu1 }
 0x166   :  { %v545_v22 = vpop.f32.mrf.mxu0  ;;  %v460_v37 = vadd.f32 %v459_v18, %v368_v33 }
 0x167   :  { %v764_v23 = vpop.f32.mrf.mxu1  ;;  %v546_v34 = vadd.f32 %v545_v22, %v452_v29 }
 0x168   :  { %v776_v26 = vpop.f32.mrf.mxu0 }
 0x169   :  { %v625_v27 = vpop.f32.mrf.mxu1 }
 0x16a   :  { %v551_v30 = vpop.f32.mrf.mxu0  ;;  %v626_v31 = vadd.f32 %v625_v27, %v540_v25 }
 0x16b   :  { %v788_v32 = vpop.f32.mrf.mxu1  ;;  %v552_v40 = vadd.f32 %v551_v30, %v460_v37 }
 0x16c   :  { %642 = vst.msk [vmem:[%s1012_s3] sm:$0xff] %vm641_vm8, %v626_v31  ;;  %648 = vrot.lane.b32.xlu1 %v626_v31, %s806_s16  ;;  %v779_v35 = vpop.f32.mrf.mxu0 }
 0x16d   :  { %v631_v36 = vpop.f32.mrf.mxu1 }
 0x16e   :  { %v632_v38 = vadd.f32 %v631_v36, %v546_v34 }
 0x16f   :  { %v791_v39 = vpop.f32.mrf.mxu1 }
 0x170   :  { %643 = vst.msk [vmem:[%s1012_s3 + $0x8] sm:$0xff] %vm641_vm8, %v632_v38  ;;  %650 = vrot.lane.b32.xlu0 %v632_v38, %s806_s16 }
 0x171   :  { %v637_v41 = vpop.f32.mrf.mxu1 }
 0x172   :  { %v638_v42 = vadd.f32 %v637_v41, %v552_v40 }
 0x173   :  { %v794_v43 = vpop.f32.mrf.mxu1 }
 0x174   :  { %644 = vst.msk [vmem:[%s1012_s3 + $0x10] sm:$0x7] %vm24_vm0, %v638_v42  ;;  %652 = vrot.lane.b32.xlu1 %v638_v42, %s806_s16 }
 0x1de   :  { %v649_v44 = vpop.permute.xlu1 %648 }
 0x1df   :  { %666 = vst.msk [vmem:[%s1012_s3 + $0x18] sm:$0xff] %vm641_vm8, %v649_v44 }
 0x1e2   :  { %v651_v45 = vpop.permute.xlu0 %650 }
 0x1e3   :  { %667 = vst.msk [vmem:[%s1012_s3 + $0x20] sm:$0xff] %vm641_vm8, %v651_v45 }
 0x1e6   :  { %v653_v46 = vpop.permute.xlu1 %652 }
 0x1e7   :  { %668 = vst.msk [vmem:[%s1012_s3 + $0x28] sm:$0x7] %vm24_vm0, %v653_v46 }

</bundles_post_ra>
